<compile_context>
chip_gen: v5e
topology: v5e:2x2
jax: 0.10.0
libtpu: 0.0.40
codegen_flags: <defaults>
</compile_context>

<pallas_src>
import functools

import jax
import jax.numpy as jnp
from jax.experimental import pallas as pl
from jax.experimental.pallas import tpu as pltpu


def _actor_kernel(x_ref, w1_ref, b1_ref, w2_ref, b2_ref, w3_ref, b3_ref,
                  o_ref, *, max_action):
    # Layer 1: Linear(S -> 256) + ReLU.  bf16 x bf16 -> f32 accumulate (MXU);
    # bias-add + ReLU + bf16 cast fused so the live activation is bf16.
    x = x_ref[...].astype(jnp.bfloat16)
    h1 = jnp.maximum(
        jnp.dot(x, w1_ref[...], preferred_element_type=jnp.float32)
        + b1_ref[...], 0.0).astype(jnp.bfloat16)
    # Layer 2: Linear(256 -> 256) + ReLU.
    h2 = jnp.maximum(
        jnp.dot(h1, w2_ref[...], preferred_element_type=jnp.float32)
        + b2_ref[...], 0.0).astype(jnp.bfloat16)
    # Layer 3: Linear(256 -> A_pad), tanh, scale.  Lane-dense bf16 store.
    h3 = jnp.dot(h2, w3_ref[...], preferred_element_type=jnp.float32)
    o_ref[...] = (max_action * jnp.tanh(h3 + b3_ref[...])).astype(o_ref.dtype)


def _round_up(x, m):
    return ((x + m - 1) // m) * m


def _tpu_config():
    """Returns (default max batch tile, #TensorCores to spread the grid over)."""
    try:
        kind = jax.devices()[0].device_kind.lower()
    except Exception:
        return 1024, 1
    if "v5 lite" in kind or "v5e" in kind or "v5litepod" in kind:
        return 512, 1      # v5e: slower MXU already hides grid overhead at 512
    if "v7" in kind:
        return 1024, 2     # v7x: 2 TCs/chip -> want an even number (>=2) of steps
    return 1024, 1         # v6e & others: single TC


def _choose_batch_tile(B, tile_cap, num_cores):
    """Pick (TM, B_pad): padding overshoot <= 7 rows per grid step, and on
    2-TC chips force >=2 (even) grid steps for reasonably sized batches."""
    n_steps = -(-B // tile_cap)
    if num_cores == 2:
        if n_steps == 1 and B >= 128:
            n_steps = 2
        elif n_steps > 1 and n_steps % 2:
            n_steps += 1
    TM = max(8, _round_up(-(-B // n_steps), 8))
    return TM, _round_up(B, TM)


@functools.partial(jax.jit, static_argnames=("max_action", "block_b"))
def actor1_forward(state, params, *, max_action, block_b=None):
    """Fused Actor1 forward pass.

    state:  [B, state_dim] float32
    params: dict with w1 [S,256] bf16, b1 [1,256] f32, w2 [256,256] bf16,
            b2 [1,256] f32, w3 [256,A] bf16, b3 [1,A] f32
            (weights already laid out as [in, out])
    returns [B, action_dim] float32
    """
    # TODO(synk): max_action is static (baked into the kernel); callers that
    # vary it per step will retrace.  Acceptable for a DDPG actor where it is
    # a fixed environment constant.
    B, S = state.shape
    A = params["w3"].shape[1]

    default_cap, num_cores = _tpu_config()
    tile_cap = block_b or default_cap

    # Lane-dense output: pad the final output dim up to a multiple of 128 so
    # the store is an unmasked full-lane vst.  Do NOT pad the feature dim S.
    A_pad = _round_up(A, 128)
    w3, b3 = params["w3"], params["b3"]
    if A_pad != A:
        w3 = jnp.pad(w3, ((0, 0), (0, A_pad - A)))
        b3 = jnp.pad(b3, ((0, 0), (0, A_pad - A)))

    TM, B_pad = _choose_batch_tile(B, tile_cap, num_cores)
    x = state if B_pad == B else jnp.pad(state, ((0, B_pad - B), (0, 0)))

    kernel = functools.partial(_actor_kernel, max_action=float(max_action))
    # Constant block index -> weights/biases stay VMEM-resident across the
    # whole batch grid (no re-DMA per step).
    resident = lambda arr: pl.BlockSpec(arr.shape, lambda i: (0, 0))

    out = pl.pallas_call(
        kernel,
        out_shape=jax.ShapeDtypeStruct((B_pad, A_pad), jnp.bfloat16),
        grid=(B_pad // TM,),
        in_specs=[
            pl.BlockSpec((TM, S), lambda i: (i, 0)),
            resident(params["w1"]), resident(params["b1"]),
            resident(params["w2"]), resident(params["b2"]),
            resident(w3), resident(b3),
        ],
        out_specs=pl.BlockSpec((TM, A_pad), lambda i: (i, 0)),
        compiler_params=pltpu.CompilerParams(
            dimension_semantics=("parallel",)),
    )(x, params["w1"], params["b1"], params["w2"], params["b2"], w3, b3)

    # Slice + f32 upcast fuse into the same jitted graph (no standalone HBM
    # round trip); precision is already bf16-limited upstream.
    return out[:B, :A].astype(jnp.float32)


def init_params(key, state_dim, action_dim, hidden=256):
    """Deterministic synthetic init (Kaiming-uniform-ish like nn.Linear).

    Weights are kept in bf16 (MXU-native fast path); biases stay f32.
    """
    ks = jax.random.split(key, 6)

    def linear(kw, kb, fan_in, fan_out):
        bound = 1.0 / jnp.sqrt(fan_in)
        w = jax.random.uniform(kw, (fan_in, fan_out), jnp.float32, -bound, bound)
        b = jax.random.uniform(kb, (1, fan_out), jnp.float32, -bound, bound)
        return w.astype(jnp.bfloat16), b

    w1, b1 = linear(ks[0], ks[1], state_dim, hidden)
    w2, b2 = linear(ks[2], ks[3], hidden, hidden)
    w3, b3 = linear(ks[4], ks[5], hidden, action_dim)
    return {"w1": w1, "b1": b1, "w2": w2, "b2": b2, "w3": w3, "b3": b3}


def actor1_reference(state, params, max_action):
    """Pure-JAX reference mirroring the kernel's precision semantics:
    bf16 matmul inputs, f32 accumulation, bf16 activations / final store."""
    f32 = lambda a: a.astype(jnp.float32)
    bf16 = lambda a: a.astype(jnp.bfloat16)
    x = bf16(state)
    h1 = bf16(jax.nn.relu(f32(x) @ f32(params["w1"]) + params["b1"]))
    h2 = bf16(jax.nn.relu(f32(h1) @ f32(params["w2"]) + params["b2"]))
    h3 = f32(h2) @ f32(params["w3"]) + params["b3"]
    return f32(bf16(max_action * jnp.tanh(h3)))


if __name__ == "__main__":
    key = jax.random.PRNGKey(0)
    k_params, k_state1, k_state2 = jax.random.split(key, 3)

    state_dim = 8
    action_dim = 4
    max_action = 2.0
    params = init_params(k_params, state_dim, action_dim)

    # Small batch (single grid step, batch padded to 8 rows).
    batch = 2
    state = jax.random.normal(k_state1, (batch, state_dim), dtype=jnp.float32)
    out = jax.block_until_ready(
        actor1_forward(state, params, max_action=max_action))
    ref = actor1_reference(state, params, max_action)
    assert out.shape == (batch, action_dim), out.shape
    assert jnp.allclose(out, ref, atol=2e-3, rtol=2e-3), (
        f"max abs err {jnp.max(jnp.abs(out - ref))}")

    # Larger batch exercising the multi-tile / tile-selection path.
    batch2 = 384
    state2 = jax.random.normal(k_state2, (batch2, state_dim), dtype=jnp.float32)
    out2 = jax.block_until_ready(
        actor1_forward(state2, params, max_action=max_action))
    ref2 = actor1_reference(state2, params, max_action)
    assert out2.shape == (batch2, action_dim), out2.shape
    assert jnp.allclose(out2, ref2, atol=2e-3, rtol=2e-3), (
        f"max abs err {jnp.max(jnp.abs(out2 - ref2))}")

    print("KERNEL_OK")
</pallas_src>

<mosaic_0001>
module attributes {stable_mosaic.version = 11 : i64} {
  func.func @_actor_kernel(%arg0: i32, %arg1: memref<8x8xf32, #tpu.memory_space<vmem>>, %arg2: memref<8x256xbf16, #tpu.memory_space<vmem>>, %arg3: memref<1x256xf32, #tpu.memory_space<vmem>>, %arg4: memref<256x256xbf16, #tpu.memory_space<vmem>>, %arg5: memref<1x256xf32, #tpu.memory_space<vmem>>, %arg6: memref<256x128xbf16, #tpu.memory_space<vmem>>, %arg7: memref<1x128xf32, #tpu.memory_space<vmem>>, %arg8: memref<8x128xbf16, #tpu.memory_space<vmem>>) attributes {dimension_semantics = [#tpu.dimension_semantics<parallel>], iteration_bounds = array<i64: 1>, scalar_prefetch = 0 : i64, scratch_operands = 0 : i64, tpu.core_type = #tpu.core_type<tc>, window_params = [{transform_indices = @transform_0, window_bounds = array<i64: 8, 8>}, {pipeline_mode = #tpu.pipeline_mode<synchronous>, transform_indices = @transform_1, window_bounds = array<i64: 8, 256>}, {pipeline_mode = #tpu.pipeline_mode<synchronous>, transform_indices = @transform_2, window_bounds = array<i64: 1, 256>}, {pipeline_mode = #tpu.pipeline_mode<synchronous>, transform_indices = @transform_3, window_bounds = array<i64: 256, 256>}, {pipeline_mode = #tpu.pipeline_mode<synchronous>, transform_indices = @transform_4, window_bounds = array<i64: 1, 256>}, {pipeline_mode = #tpu.pipeline_mode<synchronous>, transform_indices = @transform_5, window_bounds = array<i64: 256, 128>}, {pipeline_mode = #tpu.pipeline_mode<synchronous>, transform_indices = @transform_6, window_bounds = array<i64: 1, 128>}, {transform_indices = @transform_7, window_bounds = array<i64: 8, 128>}]} {
    %c0 = arith.constant 0 : index
    %c0_0 = arith.constant 0 : index
    %0 = vector.load %arg1[%c0, %c0_0] : memref<8x8xf32, #tpu.memory_space<vmem>>, vector<8x8xf32>
    %1 = arith.truncf %0 : vector<8x8xf32> to vector<8x8xbf16>
    %c0_1 = arith.constant 0 : index
    %c0_2 = arith.constant 0 : index
    %2 = vector.load %arg2[%c0_1, %c0_2] : memref<8x256xbf16, #tpu.memory_space<vmem>>, vector<8x256xbf16>
    %cst = arith.constant dense<0.000000e+00> : vector<8x256xf32>
    %3 = tpu.matmul %1, %2, %cst {dimension_numbers = #tpu.dot_dimension_numbers<[1], [0], [0], [1], [0, 0, 1, 1], [], []>} : vector<8x8xbf16>, vector<8x256xbf16>, vector<8x256xf32> -> vector<8x256xf32>
    %c0_3 = arith.constant 0 : index
    %c0_4 = arith.constant 0 : index
    %4 = vector.load %arg3[%c0_3, %c0_4] : memref<1x256xf32, #tpu.memory_space<vmem>>, vector<1x256xf32>
    %5 = vector.broadcast %4 : vector<1x256xf32> to vector<8x256xf32>
    %6 = arith.addf %3, %5 : vector<8x256xf32>
    %cst_5 = arith.constant 0.000000e+00 : f32
    %7 = vector.broadcast %cst_5 : f32 to vector<8x256xf32>
    %8 = arith.maximumf %6, %7 : vector<8x256xf32>
    %9 = arith.truncf %8 : vector<8x256xf32> to vector<8x256xbf16>
    %c0_6 = arith.constant 0 : index
    %c0_7 = arith.constant 0 : index
    %10 = vector.load %arg4[%c0_6, %c0_7] : memref<256x256xbf16, #tpu.memory_space<vmem>>, vector<256x256xbf16>
    %cst_8 = arith.constant dense<0.000000e+00> : vector<8x256xf32>
    %11 = tpu.matmul %9, %10, %cst_8 {dimension_numbers = #tpu.dot_dimension_numbers<[1], [0], [0], [1], [0, 0, 1, 1], [], []>} : vector<8x256xbf16>, vector<256x256xbf16>, vector<8x256xf32> -> vector<8x256xf32>
    %c0_9 = arith.constant 0 : index
    %c0_10 = arith.constant 0 : index
    %12 = vector.load %arg5[%c0_9, %c0_10] : memref<1x256xf32, #tpu.memory_space<vmem>>, vector<1x256xf32>
    %13 = vector.broadcast %12 : vector<1x256xf32> to vector<8x256xf32>
    %14 = arith.addf %11, %13 : vector<8x256xf32>
    %cst_11 = arith.constant 0.000000e+00 : f32
    %15 = vector.broadcast %cst_11 : f32 to vector<8x256xf32>
    %16 = arith.maximumf %14, %15 : vector<8x256xf32>
    %17 = arith.truncf %16 : vector<8x256xf32> to vector<8x256xbf16>
    %c0_12 = arith.constant 0 : index
    %c0_13 = arith.constant 0 : index
    %18 = vector.load %arg6[%c0_12, %c0_13] : memref<256x128xbf16, #tpu.memory_space<vmem>>, vector<256x128xbf16>
    %cst_14 = arith.constant dense<0.000000e+00> : vector<8x128xf32>
    %19 = tpu.matmul %17, %18, %cst_14 {dimension_numbers = #tpu.dot_dimension_numbers<[1], [0], [0], [1], [0, 0, 1, 1], [], []>} : vector<8x256xbf16>, vector<256x128xbf16>, vector<8x128xf32> -> vector<8x128xf32>
    %c0_15 = arith.constant 0 : index
    %c0_16 = arith.constant 0 : index
    %20 = vector.load %arg7[%c0_15, %c0_16] : memref<1x128xf32, #tpu.memory_space<vmem>>, vector<1x128xf32>
    %21 = vector.broadcast %20 : vector<1x128xf32> to vector<8x128xf32>
    %22 = arith.addf %19, %21 : vector<8x128xf32>
    %23 = math.tanh %22 : vector<8x128xf32>
    %cst_17 = arith.constant 2.000000e+00 : f32
    %24 = vector.broadcast %cst_17 : f32 to vector<8x128xf32>
    %25 = arith.mulf %24, %23 : vector<8x128xf32>
    %26 = arith.truncf %25 : vector<8x128xf32> to vector<8x128xbf16>
    %c0_18 = arith.constant 0 : index
    %c0_19 = arith.constant 0 : index
    %27 = vector.load %arg8[%c0_18, %c0_19] : memref<8x128xbf16, #tpu.memory_space<vmem>>, vector<8x128xbf16>
    tpu.vector_store %arg8[%c0_18, %c0_19], %26 {strides = array<i32>} : memref<8x128xbf16, #tpu.memory_space<vmem>>, vector<8x128xbf16>,
    return
  }
  func.func @transform_0(%arg0: i32) -> (i32, i32) {
    %c0_i32 = arith.constant 0 : i32
    %c0_i32_0 = arith.constant 0 : i32
    return %arg0, %c0_i32 : i32, i32
  }
  func.func @transform_1(%arg0: i32) -> (i32, i32) {
    %c0_i32 = arith.constant 0 : i32
    %c0_i32_0 = arith.constant 0 : i32
    %c0_i32_1 = arith.constant 0 : i32
    return %c0_i32, %c0_i32_0 : i32, i32
  }
  func.func @transform_2(%arg0: i32) -> (i32, i32) {
    %c0_i32 = arith.constant 0 : i32
    %c0_i32_0 = arith.constant 0 : i32
    %c0_i32_1 = arith.constant 0 : i32
    return %c0_i32, %c0_i32_0 : i32, i32
  }
  func.func @transform_3(%arg0: i32) -> (i32, i32) {
    %c0_i32 = arith.constant 0 : i32
    %c0_i32_0 = arith.constant 0 : i32
    %c0_i32_1 = arith.constant 0 : i32
    return %c0_i32, %c0_i32_0 : i32, i32
  }
  func.func @transform_4(%arg0: i32) -> (i32, i32) {
    %c0_i32 = arith.constant 0 : i32
    %c0_i32_0 = arith.constant 0 : i32
    %c0_i32_1 = arith.constant 0 : i32
    return %c0_i32, %c0_i32_0 : i32, i32
  }
  func.func @transform_5(%arg0: i32) -> (i32, i32) {
    %c0_i32 = arith.constant 0 : i32
    %c0_i32_0 = arith.constant 0 : i32
    %c0_i32_1 = arith.constant 0 : i32
    return %c0_i32, %c0_i32_0 : i32, i32
  }
  func.func @transform_6(%arg0: i32) -> (i32, i32) {
    %c0_i32 = arith.constant 0 : i32
    %c0_i32_0 = arith.constant 0 : i32
    %c0_i32_1 = arith.constant 0 : i32
    return %c0_i32, %c0_i32_0 : i32, i32
  }
  func.func @transform_7(%arg0: i32) -> (i32, i32) {
    %c0_i32 = arith.constant 0 : i32
    %c0_i32_0 = arith.constant 0 : i32
    return %arg0, %c0_i32 : i32, i32
  }
}

</mosaic_0001>

<bundles_post_ra>
// kernel: actor1_forward.1
= control target key start
LH: loop header
LB: loop body
LE: loop exit
PB: predicated region body
PF: predicated region fallthrough
CT: control target
= control target key end

     0   :  { %vm45_vm0 = vcmask 1043456   ;;  %vm41_vm1 = vcmask 64512   ;;  %s1049_s1 = inlined_call_operand.vmem [shape: bf16[8,256], index: 1, kind: input, shape index: {}]   ;;  %s1050_s0 = inlined_call_operand.vmem [shape: f32[8,8], index: 0, kind: input, shape index: {}]   ;;  %s1051_s3 = inlined_call_operand.vmem [shape: bf16[256,256], index: 3, kind: input, shape index: {}]   ;;  %s1052_s5 = inlined_call_operand.vmem [shape: bf16[256,128], index: 5, kind: input, shape index: {}]   ;;  %s1053_s2 = inlined_call_operand.vmem [shape: f32[1,256], index: 2, kind: input, shape index: {}]   ;;  %s1054_s4 = inlined_call_operand.vmem [shape: f32[1,256], index: 4, kind: input, shape index: {}]   ;;  %s1055_s6 = inlined_call_operand.vmem [shape: f32[1,128], index: 6, kind: input, shape index: {}]   ;;  %s1056_s7 = inlined_call_operand.vmem [shape: bf16[8,128], index: 7, kind: output, shape index: {}]  }
   0x1   :  { %v29_v0 = vld [vmem:[%s1049_s1] sm:$0xff]  ;;  %v562_v2 = vld [vmem:[%s1051_s3 + $0x70] sm:$0xf]  ;;  %v711_v5 = vld [vmem:[%s1051_s3 + $0x74] sm:$0xf0] }
   0x2   :  { %v27_v1 = vld [vmem:[%s1050_s0] sm:$0xff]  ;;  %v37_v3 = vunpack.c.l.b16 %v29_v0  ;;  %v38_v4 = vunpack.c.h.b16 %v29_v0  ;;  %v626_v6 = vld [vmem:[%s1051_s3 + $0xf0] sm:$0xf]  ;;  %v727_v7 = vld [vmem:[%s1051_s3 + $0xf4] sm:$0xf0]  ;;  %v563_v8 = vor.u32 %v711_v5, %v562_v2 }
   0x3   :  { %v627_v9 = vor.u32 %v727_v7, %v626_v6  ;;  %v710_v10 = vld [vmem:[%s1051_s3 + $0x74] sm:$0xf]  ;;  %v564_v11 = vld [vmem:[%s1051_s3 + $0x78] sm:$0xf0]  ;;  %v554_v17 = vld [vmem:[%s1051_s3 + $0x60] sm:$0xf]  ;;  %v28_v26 = vpack.c.bf16 %v27_v1, %v27_v1 }
   0x4   :  { %v726_v12 = vld [vmem:[%s1051_s3 + $0xf4] sm:$0xf]  ;;  %v39_v13 = vpack.c.b16 %v37_v3, %v37_v3  ;;  %v40_v14 = vpack.c.b16 %v38_v4, %v38_v4  ;;  %v567_v15 = vor.u32 %v710_v10, %v564_v11  ;;  %v628_v16 = vld [vmem:[%s1051_s3 + $0xf8] sm:$0xf0]  ;;  %v709_v18 = vld [vmem:[%s1051_s3 + $0x64] sm:$0xf0]  ;;  %280 = vmatpush.bf16.msra.mxu2 %v563_v8 }
   0x5   :  { %293 = vmatpush.bf16.msra.mxu3 %v627_v9  ;;  %v631_v19 = vor.u32 %v726_v12, %v628_v16  ;;  %v555_v20 = vor.u32 %v709_v18, %v554_v17  ;;  %v618_v21 = vld [vmem:[%s1051_s3 + $0xe0] sm:$0xf]  ;;  %v725_v22 = vld [vmem:[%s1051_s3 + $0xe4] sm:$0xf0]  ;;  %v708_v23 = vld [vmem:[%s1051_s3 + $0x64] sm:$0xf] }
   0x6   :  { %v47_v24 = vsel %vm45_vm0, %v39_v13, 0  ;;  %v50_v25 = vsel %vm45_vm0, %v40_v14, 0  ;;  %v619_v27 = vor.u32 %v725_v22, %v618_v21  ;;  %v556_v28 = vld [vmem:[%s1051_s3 + $0x68] sm:$0xf0]  ;;  %v724_v29 = vld [vmem:[%s1051_s3 + $0xe4] sm:$0xf] }
   0x7   :  { %59 = vmatpush.bf16.msra.mxu0 %v47_v24  ;;  %72 = vmatpush.bf16.msra.mxu1 %v50_v25  ;;  %v620_v30 = vld [vmem:[%s1051_s3 + $0xe8] sm:$0xf0]  ;;  %v546_v31 = vld [vmem:[%s1051_s3 + $0x50] sm:$0xf]  ;;  %v707_v32 = vld [vmem:[%s1051_s3 + $0x54] sm:$0xf0]  ;;  %v559_v33 = vor.u32 %v708_v23, %v556_v28 }
   0x8   :  { %v623_v34 = vor.u32 %v724_v29, %v620_v30  ;;  %v610_v35 = vld [vmem:[%s1051_s3 + $0xd0] sm:$0xf]  ;;  %v723_v36 = vld [vmem:[%s1051_s3 + $0xd4] sm:$0xf0]  ;;  %v706_v37 = vld [vmem:[%s1051_s3 + $0x54] sm:$0xf]  ;;  %281 = vmatpush.bf16.msra.mxu2 %v555_v20  ;;  %v547_v38 = vor.u32 %v707_v32, %v546_v31 }
   0x9   :  { %294 = vmatpush.bf16.msra.mxu3 %v619_v27  ;;  %v611_v39 = vor.u32 %v723_v36, %v610_v35  ;;  %v548_v40 = vld [vmem:[%s1051_s3 + $0x58] sm:$0xf0]  ;;  %v722_v41 = vld [vmem:[%s1051_s3 + $0xd4] sm:$0xf]  ;;  %v538_v43 = vld [vmem:[%s1051_s3 + $0x40] sm:$0xf] }
   0xa   :  { %v612_v42 = vld [vmem:[%s1051_s3 + $0xd8] sm:$0xf0]  ;;  %502 = vmatmul.msk.bf16.vlgmr.msra.gmra.mxu0 %vm41_vm1, %v28_v26  ;;  %503 = vmatmul.msk.bf16.vlgmr.msra.gmra.mxu1 %vm41_vm1, %v28_v26  ;;  %v705_v44 = vld [vmem:[%s1051_s3 + $0x44] sm:$0xf0]  ;;  %v602_v45 = vld [vmem:[%s1051_s3 + $0xc0] sm:$0xf]  ;;  %v551_v47 = vor.u32 %v706_v37, %v548_v40 }
   0xb   :  { %306 = vmatpush.bf16.msrb.mxu0 %v567_v15  ;;  %319 = vmatpush.bf16.msrb.mxu1 %v631_v19  ;;  %v721_v46 = vld [vmem:[%s1051_s3 + $0xc4] sm:$0xf0]  ;;  %v615_v48 = vor.u32 %v722_v41, %v612_v42  ;;  %v704_v49 = vld [vmem:[%s1051_s3 + $0x44] sm:$0xf]  ;;  %v540_v50 = vld [vmem:[%s1051_s3 + $0x48] sm:$0xf0]  ;;  %v539_v51 = vor.u32 %v705_v44, %v538_v43 }
   0xc   :  { %282 = vmatpush.bf16.msra.mxu2 %v547_v38  ;;  %v603_v52 = vor.u32 %v721_v46, %v602_v45  ;;  %v720_v53 = vld [vmem:[%s1051_s3 + $0xc4] sm:$0xf]  ;;  %v604_v54 = vld [vmem:[%s1051_s3 + $0xc8] sm:$0xf0]  ;;  %v530_v55 = vld [vmem:[%s1051_s3 + $0x30] sm:$0xf]  ;;  %v543_v59 = vor.u32 %v704_v49, %v540_v50 }
   0xd   :  { %295 = vmatpush.bf16.msra.mxu3 %v611_v39  ;;  %v703_v56 = vld [vmem:[%s1051_s3 + $0x34] sm:$0xf0]  ;;  %v594_v57 = vld [vmem:[%s1051_s3 + $0xb0] sm:$0xf]  ;;  %v607_v60 = vor.u32 %v720_v53, %v604_v54  ;;  %v702_v61 = vld [vmem:[%s1051_s3 + $0x34] sm:$0xf] }
   0xe   :  { %v719_v58 = vld [vmem:[%s1051_s3 + $0xb4] sm:$0xf0]  ;;  %v532_v62 = vld [vmem:[%s1051_s3 + $0x38] sm:$0xf0]  ;;  %v531_v63 = vor.u32 %v703_v56, %v530_v55  ;;  %v718_v1 = vld [vmem:[%s1051_s3 + $0xb4] sm:$0xf] }
   0xf   :  { %307 = vmatpush.bf16.msrb.mxu0 %v559_v33  ;;  %320 = vmatpush.bf16.msrb.mxu1 %v623_v34  ;;  %v595_v0 = vor.u32 %v719_v58, %v594_v57  ;;  %v596_v2 = vld [vmem:[%s1051_s3 + $0xb8] sm:$0xf0]  ;;  %v522_v3 = vld [vmem:[%s1051_s3 + $0x20] sm:$0xf]  ;;  %v701_v4 = vld [vmem:[%s1051_s3 + $0x24] sm:$0xf0]  ;;  %v535_v7 = vor.u32 %v702_v61, %v532_v62 }
  0x10   :  { %283 = vmatpush.bf16.msra.mxu2 %v539_v51  ;;  %v586_v5 = vld [vmem:[%s1051_s3 + $0xa0] sm:$0xf]  ;;  %v717_v6 = vld [vmem:[%s1051_s3 + $0xa4] sm:$0xf0]  ;;  %v599_v8 = vor.u32 %v718_v1, %v596_v2  ;;  %v700_v9 = vld [vmem:[%s1051_s3 + $0x24] sm:$0xf]  ;;  %v523_v10 = vor.u32 %v701_v4, %v522_v3 }
  0x11   :  { %296 = vmatpush.bf16.msra.mxu3 %v603_v52  ;;  %v587_v11 = vor.u32 %v717_v6, %v586_v5  ;;  %v524_v12 = vld [vmem:[%s1051_s3 + $0x28] sm:$0xf0]  ;;  %v716_v13 = vld [vmem:[%s1051_s3 + $0xa4] sm:$0xf]  ;;  %v514_v17 = vld [vmem:[%s1051_s3 + $0x10] sm:$0xf] }
  0x12   :  { %v588_v14 = vld [vmem:[%s1051_s3 + $0xa8] sm:$0xf0]  ;;  %v527_v15 = vor.u32 %v700_v9, %v524_v12  ;;  %v699_v18 = vld [vmem:[%s1051_s3 + $0x14] sm:$0xf0]  ;;  %v578_v19 = vld [vmem:[%s1051_s3 + $0x90] sm:$0xf] }
  0x13   :  { %308 = vmatpush.bf16.msrb.mxu0 %v551_v47  ;;  %321 = vmatpush.bf16.msrb.mxu1 %v615_v48  ;;  %v591_v16 = vor.u32 %v716_v13, %v588_v14  ;;  %v515_v20 = vor.u32 %v699_v18, %v514_v17  ;;  %v715_v21 = vld [vmem:[%s1051_s3 + $0x94] sm:$0xf0]  ;;  %v698_v22 = vld [vmem:[%s1051_s3 + $0x14] sm:$0xf]  ;;  %v516_v23 = vld [vmem:[%s1051_s3 + $0x18] sm:$0xf0] }
  0x14   :  { %284 = vmatpush.bf16.msra.mxu2 %v531_v63  ;;  %v579_v24 = vor.u32 %v715_v21, %v578_v19  ;;  %v519_v25 = vor.u32 %v698_v22, %v516_v23  ;;  %v714_v26 = vld [vmem:[%s1051_s3 + $0x94] sm:$0xf]  ;;  %v580_v27 = vld [vmem:[%s1051_s3 + $0x98] sm:$0xf0]  ;;  %v506_v29 = vld [vmem:[%s1051_s3] sm:$0xf] }
  0x15   :  { %297 = vmatpush.bf16.msra.mxu3 %v595_v0  ;;  %v583_v28 = vor.u32 %v714_v26, %v580_v27  ;;  %v697_v30 = vld [vmem:[%s1051_s3 + $0x4] sm:$0xf0]  ;;  %v570_v31 = vld [vmem:[%s1051_s3 + $0x80] sm:$0xf]  ;;  %v696_v34 = vld [vmem:[%s1051_s3 + $0x4] sm:$0xf] }
  0x16   :  { %v507_v32 = vor.u32 %v697_v30, %v506_v29  ;;  %v713_v33 = vld [vmem:[%s1051_s3 + $0x84] sm:$0xf0]  ;;  %v508_v35 = vld [vmem:[%s1051_s3 + $0x8] sm:$0xf0]  ;;  %v712_v38 = vld [vmem:[%s1051_s3 + $0x84] sm:$0xf] }
  0x17   :  { %309 = vmatpush.bf16.msrb.mxu0 %v543_v59  ;;  %322 = vmatpush.bf16.msrb.mxu1 %v607_v60  ;;  %v571_v36 = vor.u32 %v713_v33, %v570_v31  ;;  %v511_v37 = vor.u32 %v696_v34, %v508_v35  ;;  %v572_v39 = vld [vmem:[%s1051_s3 + $0x88] sm:$0xf0]  ;;  %v743_v41 = vld [vmem:[%s1052_s5 + $0x78] sm:$0xff]  ;;  %v742_v43 = vld [vmem:[%s1052_s5 + $0x70] sm:$0xff] }
  0x18   :  { %285 = vmatpush.bf16.msra.mxu2 %v523_v10  ;;  %v575_v40 = vor.u32 %v712_v38, %v572_v39  ;;  %v735_v42 = vld [vmem:[%s1052_s5 + $0x38] sm:$0xff]  ;;  %v734_v44 = vld [vmem:[%s1052_s5 + $0x30] sm:$0xff]  ;;  %v741_v45 = vld [vmem:[%s1052_s5 + $0x68] sm:$0xff] }
  0x19   :  { %298 = vmatpush.bf16.msra.mxu3 %v587_v11  ;;  %v733_v46 = vld [vmem:[%s1052_s5 + $0x28] sm:$0xff]  ;;  %v740_v47 = vld [vmem:[%s1052_s5 + $0x60] sm:$0xff]  ;;  %v739_v49 = vld [vmem:[%s1052_s5 + $0x58] sm:$0xff] }
  0x1a   :  { %v732_v48 = vld [vmem:[%s1052_s5 + $0x20] sm:$0xff]  ;;  %v738_v51 = vld [vmem:[%s1052_s5 + $0x50] sm:$0xff]  ;;  %v731_v0 = vld [vmem:[%s1052_s5 + $0x18] sm:$0xff] }
  0x1b   :  { %310 = vmatpush.bf16.msrb.mxu0 %v535_v7  ;;  %323 = vmatpush.bf16.msrb.mxu1 %v599_v8  ;;  %v30_v50 = vld [vmem:[%s1053_s2] sm:$0x3]  ;;  %v737_v1 = vld [vmem:[%s1052_s5 + $0x48] sm:$0xff]  ;;  %v730_v2 = vld [vmem:[%s1052_s5 + $0x10] sm:$0xff] }
  0x1c   :  { %286 = vmatpush.bf16.msra.mxu2 %v515_v20  ;;  %v32_v52 = vperm.slane %v30_v50, 0  ;;  %v33_v53 = vperm.slane %v30_v50, 1  ;;  %v736_v3 = vld [vmem:[%s1052_s5 + $0x40] sm:$0xff]  ;;  %v729_v4 = vld [vmem:[%s1052_s5 + $0x8] sm:$0xff] }
  0x1d   :  { %299 = vmatpush.bf16.msra.mxu3 %v579_v24  ;;  %v728_v5 = vld [vmem:[%s1052_s5] sm:$0xff] }
  0x1e   :  { %v114_v6 = vld [vmem:[%s1054_s4] sm:$0x3] }
  0x1f   :  { %311 = vmatpush.bf16.msrb.mxu0 %v527_v15  ;;  %324 = vmatpush.bf16.msrb.mxu1 %v591_v16  ;;  %v117_v7 = vperm.slane %v114_v6, 1  ;;  %v116_v11 = vperm.slane %v114_v6, 0  ;;  %v744_v26 = vld [vmem:[%s1055_s6] ss:$0 sm:$0xff] }
  0x20   :  { %287 = vmatpush.bf16.msra.mxu2 %v507_v32 }
  0x21   :  { %300 = vmatpush.bf16.msra.mxu3 %v571_v36 }
  0x23   :  { %312 = vmatpush.bf16.msrb.mxu0 %v519_v25  ;;  %325 = vmatpush.bf16.msrb.mxu1 %v583_v28 }
  0x24   :  { %468 = vmatpush.bf16.msrb.mxu2 %v735_v42 }
  0x25   :  { %481 = vmatpush.bf16.msrb.mxu3 %v743_v41 }
  0x27   :  { %313 = vmatpush.bf16.msrb.mxu0 %v511_v37  ;;  %326 = vmatpush.bf16.msrb.mxu1 %v575_v40 }
  0x28   :  { %469 = vmatpush.bf16.msrb.mxu2 %v734_v44 }
  0x29   :  { %482 = vmatpush.bf16.msrb.mxu3 %v742_v43 }
  0x2c   :  { %470 = vmatpush.bf16.msrb.mxu2 %v733_v46 }
  0x2d   :  { %483 = vmatpush.bf16.msrb.mxu3 %v741_v45 }
  0x30   :  { %471 = vmatpush.bf16.msrb.mxu2 %v732_v48 }
  0x31   :  { %484 = vmatpush.bf16.msrb.mxu3 %v740_v47 }
  0x34   :  { %472 = vmatpush.bf16.msrb.mxu2 %v731_v0 }
  0x35   :  { %485 = vmatpush.bf16.msrb.mxu3 %v739_v49 }
  0x38   :  { %473 = vmatpush.bf16.msrb.mxu2 %v730_v2 }
  0x39   :  { %486 = vmatpush.bf16.msrb.mxu3 %v738_v51 }
  0x3c   :  { %474 = vmatpush.bf16.msrb.mxu2 %v729_v4 }
  0x3d   :  { %487 = vmatpush.bf16.msrb.mxu3 %v737_v1 }
  0x40   :  { %475 = vmatpush.bf16.msrb.mxu2 %v728_v5 }
  0x41   :  { %488 = vmatpush.bf16.msrb.mxu3 %v736_v3 }
  0x87   :  { %v61_v54 = vpop.f32.mrf.mxu0  ;;  %v74_v55 = vpop.f32.mrf.mxu1 }
  0x88   :  { %v62_v56 = vadd.f32 %v61_v54, %v32_v52  ;;  %v75_v57 = vadd.f32 %v74_v55, %v33_v53 }
  0x8a   :  { %v78_v58 = vmax.f32 %v62_v56, 0.0  ;;  %v79_v59 = vmax.f32 %v75_v57, 0.0 }
  0x8c   :  { %v80_v60 = vpack.c.bf16 %v78_v58, %v78_v58  ;;  %v81_v61 = vpack.c.bf16 %v79_v59, %v79_v59 }
  0x8e   :  { %288 = vmatmul.bf16.vlgmr.msra.gmra.mxu2 %v80_v60  ;;  %301 = vmatmul.bf16.vlgmr.msra.gmra.mxu3 %v81_v61 }
  0x8f   :  { %314 = vmatmul.bf16.vlgmr.msrb.gmra.mxu0 %v80_v60  ;;  %327 = vmatmul.bf16.vlgmr.msrb.gmra.mxu1 %v81_v61  ;;  %v63_v62 = vpop.f32.mrf.mxu0  ;;  %v76_v63 = vpop.f32.mrf.mxu1 }
 0x10c   :  { %v315_v8 = vpop.f32.mrf.mxu0  ;;  %v328_v9 = vpop.f32.mrf.mxu1 }
 0x10d   :  { %v316_v10 = vadd.f32 %v315_v8, %v117_v7 }
 0x10f   :  { %v329_v12 = vadd.f32 %v328_v9, %v316_v10 }
 0x111   :  { %v333_v13 = vmax.f32 %v329_v12, 0.0  ;;  %v289_v14 = vpop.f32.mrf.mxu2  ;;  %v302_v15 = vpop.f32.mrf.mxu3 }
 0x112   :  { %v290_v16 = vadd.f32 %v289_v14, %v116_v11 }
 0x113   :  { %v335_v17 = vpack.c.bf16 %v333_v13, %v333_v13 }
 0x114   :  { %v303_v18 = vadd.f32 %v302_v15, %v290_v16  ;;  %v317_v19 = vpop.f32.mrf.mxu0  ;;  %v330_v20 = vpop.f32.mrf.mxu1 }
 0x115   :  { %489 = vmatmul.bf16.vlgmr.msrb.gmra.mxu3 %v335_v17 }
 0x116   :  { %v332_v21 = vmax.f32 %v303_v18, 0.0 }
 0x118   :  { %v334_v22 = vpack.c.bf16 %v332_v21, %v332_v21 }
 0x119   :  { %v291_v23 = vpop.f32.mrf.mxu2  ;;  %v304_v24 = vpop.f32.mrf.mxu3 }
 0x11a   :  { %476 = vmatmul.bf16.vlgmr.msrb.gmra.mxu2 %v334_v22 }
 0x198   :  { %v490_v25 = vpop.f32.mrf.mxu3 }
 0x19d   :  { %v477_v27 = vpop.f32.mrf.mxu2 }
 0x19e   :  { %v478_v28 = vadd.f32 %v744_v26, %v477_v27 }
 0x1a0   :  { %v491_v29 = vadd.f32 %v490_v25, %v478_v28  ;;  %v492_v30 = vpop.f32.mrf.mxu3 }
 0x1a2   :  { %745 = vtanh.f32 %v491_v29 }
 0x1a5   :  { %v479_v31 = vpop.f32.mrf.mxu2 }
 0x1a8   :  { %v746_v32 = vpop.eup %745 }
 0x1a9   :  { %v495_v33 = vmul.f32 2.0, %v746_v32 }
 0x1ab   :  { %v496_v34 = vpack.c.bf16 %v495_v33, %v495_v33 }
 0x1ad   :  { %497 = vst [vmem:[%s1056_s7] sm:$0xf] %v496_v34 }

</bundles_post_ra>
